<compile_context>
chip_gen: v7x
topology: tpu7x:2x2x1
jax: 0.10.0
libtpu: 0.0.40
codegen_flags: <defaults>
</compile_context>

<pallas_src>
import math
import jax
import jax.numpy as jnp
from jax.experimental import pallas as pl
from jax.experimental.pallas import tpu as pltpu

# ---- problem sizes (small, consistent with the module) ----
BS = 2
N = 8            # num_patches (sequence length)
D = 32           # model_dim
FF = 64          # ff_dim
H = 2            # num_heads
EPS = 1e-5

ROWS = BS * N    # 16 rows: batch folded into the row dimension
HP = 128         # per-head padded lane width inside the fused QKV result

# fused output slab layout (lane offsets)
OUT_W = 128
P_OUT = 0                  # [0, 32)   : block output
P_PROBS = D                # [32, 48)  : attention probs (H*N = 16 lanes)
P_K = D + H * N            # [48, 112) : shared k (H*D = 64 lanes)
P_PAD = D + H * N + H * D  # [112,128) : zero pad


def _layer_norm(x, g, b):
    mu = jnp.mean(x, axis=-1, keepdims=True)
    var = jnp.mean((x - mu) ** 2, axis=-1, keepdims=True)
    return (x - mu) * jax.lax.rsqrt(var + EPS) * g + b


def _encoder_kernel(
    x_ref,          # (ROWS, D)
    wqkvT_ref,      # (D, 3*H*HP)  [q_h0 | q_h1 | k_h0 | k_h1 | v_h0 | v_h1], each 128-lane padded
    woT_ref,        # (H*HP, D)    row-padded to match padded context layout
    w1T_ref,        # (D, FF)
    w2T_ref,        # (FF, D)
    pp_ref,         # (8, 128)     packed small params (one DMA)
    out_ref,        # (ROWS, 128)  fused output slab
):
    x = x_ref[...]                                          # (ROWS, D)

    # unpack small params (prefix lane slices at offset 0)
    pp = pp_ref[...]
    bo = pp[0:1, 0:D]
    ln1g = pp[1:2, 0:D]
    ln1b = pp[2:3, 0:D]
    b1 = pp[3:4, 0:FF]
    b2 = pp[4:5, 0:D]
    ln2g = pp[5:6, 0:D]
    ln2b = pp[6:7, 0:D]

    # ---- self-attention (pre-norm) ----
    xn = _layer_norm(x, ln1g, ln1b)                         # (ROWS, D)

    # fused QKV projection: one MXU pass, head blocks padded to 128 lanes
    qkv = jnp.dot(xn, wqkvT_ref[...], preferred_element_type=jnp.float32)  # (ROWS, 3*H*HP)

    scale = 1.0 / math.sqrt(D)
    prob_blocks = []
    ctx_blocks = []
    for b in range(BS):                                     # static unrolled
        rows = slice(b * N, (b + 1) * N)
        p_heads, c_heads = [], []
        for h in range(H):                                  # static unrolled
            q_cols = slice(h * HP, (h + 1) * HP)
            k_cols = slice((H + h) * HP, (H + h + 1) * HP)
            v_cols = slice((2 * H + h) * HP, (2 * H + h + 1) * HP)
            qh = qkv[rows, q_cols]                          # (N, HP), lanes D: are zero
            kh = qkv[rows, k_cols]
            vh = qkv[rows, v_cols]
            # contract last dims of both operands -> no explicit transpose materialized
            s = jax.lax.dot_general(
                qh, kh, (((1,), (1,)), ((), ())),
                preferred_element_type=jnp.float32) * scale     # (N, N)
            s = s - jnp.max(s, axis=-1, keepdims=True)
            e = jnp.exp(s)
            denom = jnp.sum(e, axis=-1, keepdims=True)
            inv = pl.reciprocal(denom, approx=True)         # EUP slot
            inv = inv * (2.0 - denom * inv)                 # 1 NR step -> f32-exact
            p = e * inv                                     # dropout = identity (eval)
            p_heads.append(p)
            c_heads.append(jnp.dot(p, vh, preferred_element_type=jnp.float32))  # (N, HP)
        prob_blocks.append(jnp.concatenate(p_heads, axis=-1))   # (N, H*N)
        ctx_blocks.append(jnp.concatenate(c_heads, axis=-1))    # (N, H*HP)

    probs = jnp.concatenate(prob_blocks, axis=0)                 # (ROWS, H*N)
    ctx = jnp.concatenate(ctx_blocks, axis=0)                    # (ROWS, H*HP)

    # single out-projection matmul across all rows/heads (padded lanes are zero)
    attn = (jnp.dot(ctx, woT_ref[...], preferred_element_type=jnp.float32)
            + bo + xn)                                           # residual on NORMALIZED x

    # ---- feedforward (pre-norm) ----
    xn2 = _layer_norm(attn, ln2g, ln2b)
    h1 = jnp.dot(xn2, w1T_ref[...], preferred_element_type=jnp.float32) + b1
    g = h1 * 0.5 * (1.0 + jax.lax.erf(h1 * (1.0 / math.sqrt(2.0))))  # exact gelu
    ff = (jnp.dot(g, w2T_ref[...], preferred_element_type=jnp.float32)
          + b2 + xn2)                                            # residual on NORMALIZED attn

    # dense shared-k: first D lanes of each padded k-head block, head-major
    k_dense = jnp.concatenate(
        [qkv[:, (H + h) * HP:(H + h) * HP + D] for h in range(H)], axis=-1)  # (ROWS, H*D)

    # fused, lane-dense 128-wide output slab: one unmasked store, one DMA
    pad = jnp.zeros((ROWS, OUT_W - P_PAD), jnp.float32)
    out_ref[...] = jnp.concatenate([ff, probs, k_dense, pad], axis=-1)


def prepare_params(params):
    """One-time (per set of weights) layout preparation, hoisted out of the call path."""
    (wq, wk, wv, wo, bo, ln1g, ln1b, w1, b1, w2, b2, ln2g, ln2b) = params

    def pad_head_cols(wT):  # wT: (D, H*D) -> list of (D, HP) blocks per head
        return [jnp.pad(wT[:, h * D:(h + 1) * D], ((0, 0), (0, HP - D))) for h in range(H)]

    qb = pad_head_cols(wq.T)
    kb = pad_head_cols(wk.T)
    vb = pad_head_cols(wv.T)
    wqkvT = jnp.concatenate(qb + kb + vb, axis=-1)              # (D, 3*H*HP)

    woT = wo.T                                                  # (H*D, D)
    woT_pad = jnp.concatenate(
        [jnp.pad(woT[h * D:(h + 1) * D, :], ((0, HP - D), (0, 0))) for h in range(H)],
        axis=0)                                                 # (H*HP, D)

    w1T = w1.T                                                  # (D, FF)
    w2T = w2.T                                                  # (FF, D)

    pp = jnp.zeros((8, 128), jnp.float32)
    pp = pp.at[0, :D].set(bo)
    pp = pp.at[1, :D].set(ln1g)
    pp = pp.at[2, :D].set(ln1b)
    pp = pp.at[3, :FF].set(b1)
    pp = pp.at[4, :D].set(b2)
    pp = pp.at[5, :D].set(ln2g)
    pp = pp.at[6, :D].set(ln2b)
    return (wqkvT, woT_pad, w1T, w2T, pp)


@jax.jit
def encoder_block(x, wqkvT, woT, w1T, w2T, pp):
    """x: (BS, N, D) float32, weights from prepare_params. Returns (out, probs, k)."""
    x2 = x.reshape(ROWS, D)
    full = lambda shape: pl.BlockSpec(shape, lambda i: (0,) * len(shape))

    slab = pl.pallas_call(
        _encoder_kernel,
        out_shape=jax.ShapeDtypeStruct((ROWS, OUT_W), jnp.float32),
        grid=(1,),
        in_specs=[
            full((ROWS, D)),
            full((D, 3 * H * HP)),
            full((H * HP, D)),
            full((D, FF)),
            full((FF, D)),
            full((8, 128)),
        ],
        out_specs=full((ROWS, OUT_W)),
        compiler_params=pltpu.CompilerParams(dimension_semantics=("arbitrary",)),
    )(x2, wqkvT, woT, w1T, w2T, pp)

    # layout plumbing back to the module's external contract
    out = slab[:, P_OUT:P_OUT + D].reshape(BS, N, D)
    probs = slab[:, P_PROBS:P_PROBS + H * N].reshape(BS, N, H, N).transpose(0, 2, 1, 3)
    k = slab[:, P_K:P_K + H * D].reshape(BS, N, H, D).transpose(0, 2, 1, 3)
    return out, probs, k


# ---------- pure-JAX reference (mirrors the PyTorch forward) ----------
def reference(x, params):
    (wq, wk, wv, wo, bo, ln1g, ln1b, w1, b1, w2, b2, ln2g, ln2b) = params

    def ln(x, g, b):
        mu = x.mean(-1, keepdims=True)
        var = ((x - mu) ** 2).mean(-1, keepdims=True)
        return (x - mu) / jnp.sqrt(var + EPS) * g + b

    xn = ln(x, ln1g, ln1b)
    q = (xn @ wq.T).reshape(BS, N, H, D).transpose(0, 2, 1, 3)
    k = (xn @ wk.T).reshape(BS, N, H, D).transpose(0, 2, 1, 3)
    v = (xn @ wv.T).reshape(BS, N, H, D).transpose(0, 2, 1, 3)
    s = jnp.einsum('bhid,bhjd->bhij', q, k) / math.sqrt(D)
    p = jax.nn.softmax(s, axis=-1)
    ctx = jnp.einsum('bhij,bhjd->bhid', p, v)
    ctx = ctx.transpose(0, 2, 1, 3).reshape(BS, N, H * D)
    out = ctx @ wo.T + bo + xn

    xn2 = ln(out, ln2g, ln2b)
    h1 = xn2 @ w1.T + b1
    g = h1 * 0.5 * (1.0 + jax.lax.erf(h1 / math.sqrt(2.0)))
    ff = g @ w2.T + b2 + xn2
    return ff, p, k


if __name__ == "__main__":
    key = jax.random.PRNGKey(0)
    ks = jax.random.split(key, 16)
    nrm = lambda k, s: (0.02 * jax.random.normal(k, s)).astype(jnp.float32)

    x = jax.random.normal(ks[0], (BS, N, D), dtype=jnp.float32)

    params = (
        nrm(ks[1], (H * D, D)),                       # Wq
        nrm(ks[2], (H * D, D)),                       # Wk
        nrm(ks[3], (H * D, D)),                       # Wv
        nrm(ks[4], (D, H * D)),                       # Wo
        nrm(ks[5], (D,)),                             # bo
        (1.0 + nrm(ks[6], (D,))),                     # ln1 gamma
        nrm(ks[7], (D,)),                             # ln1 beta
        nrm(ks[8], (FF, D)),                          # fc1 W
        nrm(ks[9], (FF,)),                            # fc1 b
        nrm(ks[10], (D, FF)),                         # fc2 W
        nrm(ks[11], (D,)),                            # fc2 b
        (1.0 + nrm(ks[12], (D,))),                    # ln2 gamma
        nrm(ks[13], (D,)),                            # ln2 beta
    )

    # one-time weight preparation (hoisted out of the per-call path)
    prepped = jax.tree.map(jax.block_until_ready, prepare_params(params))

    out, probs, kshared = encoder_block(x, *prepped)
    jax.block_until_ready((out, probs, kshared))

    ref_out, ref_probs, ref_k = reference(x, params)
    assert jnp.allclose(out, ref_out, rtol=1e-4, atol=1e-4), "output mismatch"
    assert jnp.allclose(probs, ref_probs, rtol=1e-4, atol=1e-5), "attn probs mismatch"
    assert jnp.allclose(kshared, ref_k, rtol=1e-4, atol=1e-5), "shared k mismatch"

    print("KERNEL_OK")
</pallas_src>

<mosaic_0001>
module attributes {stable_mosaic.version = 11 : i64} {
  func.func @_encoder_kernel(%arg0: i32, %arg1: memref<16x32xf32, #tpu.memory_space<vmem>>, %arg2: memref<32x768xf32, #tpu.memory_space<vmem>>, %arg3: memref<256x32xf32, #tpu.memory_space<vmem>>, %arg4: memref<32x64xf32, #tpu.memory_space<vmem>>, %arg5: memref<64x32xf32, #tpu.memory_space<vmem>>, %arg6: memref<8x128xf32, #tpu.memory_space<vmem>>, %arg7: memref<16x128xf32, #tpu.memory_space<vmem>>) attributes {dimension_semantics = [#tpu.dimension_semantics<arbitrary>], iteration_bounds = array<i64: 1>, scalar_prefetch = 0 : i64, scratch_operands = 0 : i64, tpu.core_type = #tpu.core_type<tc>, window_params = [{pipeline_mode = #tpu.pipeline_mode<synchronous>, transform_indices = @transform_0, window_bounds = array<i64: 16, 32>}, {pipeline_mode = #tpu.pipeline_mode<synchronous>, transform_indices = @transform_1, window_bounds = array<i64: 32, 768>}, {pipeline_mode = #tpu.pipeline_mode<synchronous>, transform_indices = @transform_2, window_bounds = array<i64: 256, 32>}, {pipeline_mode = #tpu.pipeline_mode<synchronous>, transform_indices = @transform_3, window_bounds = array<i64: 32, 64>}, {pipeline_mode = #tpu.pipeline_mode<synchronous>, transform_indices = @transform_4, window_bounds = array<i64: 64, 32>}, {pipeline_mode = #tpu.pipeline_mode<synchronous>, transform_indices = @transform_5, window_bounds = array<i64: 8, 128>}, {pipeline_mode = #tpu.pipeline_mode<synchronous>, transform_indices = @transform_6, window_bounds = array<i64: 16, 128>}]} {
    %c0 = arith.constant 0 : index
    %c0_0 = arith.constant 0 : index
    %0 = vector.load %arg1[%c0, %c0_0] : memref<16x32xf32, #tpu.memory_space<vmem>>, vector<16x32xf32>
    %c0_1 = arith.constant 0 : index
    %c0_2 = arith.constant 0 : index
    %1 = vector.load %arg6[%c0_1, %c0_2] : memref<8x128xf32, #tpu.memory_space<vmem>>, vector<8x128xf32>
    %2 = vector.extract_strided_slice %1 {offsets = [0, 0], sizes = [1, 32], strides = [1, 1]} : vector<8x128xf32> to vector<1x32xf32>
    %3 = vector.extract_strided_slice %1 {offsets = [1, 0], sizes = [1, 32], strides = [1, 1]} : vector<8x128xf32> to vector<1x32xf32>
    %4 = vector.extract_strided_slice %1 {offsets = [2, 0], sizes = [1, 32], strides = [1, 1]} : vector<8x128xf32> to vector<1x32xf32>
    %5 = vector.extract_strided_slice %1 {offsets = [3, 0], sizes = [1, 64], strides = [1, 1]} : vector<8x128xf32> to vector<1x64xf32>
    %6 = vector.extract_strided_slice %1 {offsets = [4, 0], sizes = [1, 32], strides = [1, 1]} : vector<8x128xf32> to vector<1x32xf32>
    %7 = vector.extract_strided_slice %1 {offsets = [5, 0], sizes = [1, 32], strides = [1, 1]} : vector<8x128xf32> to vector<1x32xf32>
    %8 = vector.extract_strided_slice %1 {offsets = [6, 0], sizes = [1, 32], strides = [1, 1]} : vector<8x128xf32> to vector<1x32xf32>
    %cst = arith.constant dense<0.000000e+00> : vector<16xf32>
    %9 = vector.multi_reduction <add>, %0, %cst [1] : vector<16x32xf32> to vector<16xf32>
    %10 = vector.shape_cast %9 : vector<16xf32> to vector<16x1xf32>
    %cst_3 = arith.constant 3.200000e+01 : f32
    %11 = vector.broadcast %cst_3 : f32 to vector<16x1xf32>
    %12 = arith.divf %10, %11 : vector<16x1xf32>
    %13 = vector.broadcast %12 : vector<16x1xf32> to vector<16x32xf32>
    %14 = arith.subf %0, %13 : vector<16x32xf32>
    %15 = arith.mulf %14, %14 : vector<16x32xf32>
    %cst_4 = arith.constant dense<0.000000e+00> : vector<16xf32>
    %16 = vector.multi_reduction <add>, %15, %cst_4 [1] : vector<16x32xf32> to vector<16xf32>
    %17 = vector.shape_cast %16 : vector<16xf32> to vector<16x1xf32>
    %cst_5 = arith.constant 3.200000e+01 : f32
    %18 = vector.broadcast %cst_5 : f32 to vector<16x1xf32>
    %19 = arith.divf %17, %18 : vector<16x1xf32>
    %20 = vector.broadcast %12 : vector<16x1xf32> to vector<16x32xf32>
    %21 = arith.subf %0, %20 : vector<16x32xf32>
    %cst_6 = arith.constant 9.99999974E-6 : f32
    %22 = vector.broadcast %cst_6 : f32 to vector<16x1xf32>
    %23 = arith.addf %19, %22 : vector<16x1xf32>
    %24 = math.rsqrt %23 : vector<16x1xf32>
    %25 = vector.broadcast %24 : vector<16x1xf32> to vector<16x32xf32>
    %26 = arith.mulf %21, %25 : vector<16x32xf32>
    %27 = vector.broadcast %3 : vector<1x32xf32> to vector<16x32xf32>
    %28 = arith.mulf %26, %27 : vector<16x32xf32>
    %29 = vector.broadcast %4 : vector<1x32xf32> to vector<16x32xf32>
    %30 = arith.addf %28, %29 : vector<16x32xf32>
    %c0_7 = arith.constant 0 : index
    %c0_8 = arith.constant 0 : index
    %31 = vector.load %arg2[%c0_7, %c0_8] : memref<32x768xf32, #tpu.memory_space<vmem>>, vector<32x768xf32>
    %cst_9 = arith.constant dense<0.000000e+00> : vector<16x768xf32>
    %32 = tpu.matmul %30, %31, %cst_9 {dimension_numbers = #tpu.dot_dimension_numbers<[1], [0], [0], [1], [0, 0, 1, 1], [], []>} : vector<16x32xf32>, vector<32x768xf32>, vector<16x768xf32> -> vector<16x768xf32>
    %33 = vector.extract_strided_slice %32 {offsets = [0, 0], sizes = [8, 128], strides = [1, 1]} : vector<16x768xf32> to vector<8x128xf32>
    %34 = vector.extract_strided_slice %32 {offsets = [0, 256], sizes = [8, 128], strides = [1, 1]} : vector<16x768xf32> to vector<8x128xf32>
    %35 = vector.extract_strided_slice %32 {offsets = [0, 512], sizes = [8, 128], strides = [1, 1]} : vector<16x768xf32> to vector<8x128xf32>
    %cst_10 = arith.constant dense<0.000000e+00> : vector<8x8xf32>
    %36 = tpu.matmul %33, %34, %cst_10 {dimension_numbers = #tpu.dot_dimension_numbers<[1], [1], [0], [0], [0, 0, 1, 0], [], []>} : vector<8x128xf32>, vector<8x128xf32>, vector<8x8xf32> -> vector<8x8xf32>
    %cst_11 = arith.constant 0.176776692 : f32
    %37 = vector.broadcast %cst_11 : f32 to vector<8x8xf32>
    %38 = arith.mulf %36, %37 : vector<8x8xf32>
    %cst_12 = arith.constant dense<0xFF800000> : vector<8xf32>
    %39 = vector.multi_reduction <maximumf>, %38, %cst_12 [1] : vector<8x8xf32> to vector<8xf32>
    %40 = vector.shape_cast %39 : vector<8xf32> to vector<8x1xf32>
    %41 = vector.broadcast %40 : vector<8x1xf32> to vector<8x8xf32>
    %42 = arith.subf %38, %41 : vector<8x8xf32>
    %43 = math.exp %42 : vector<8x8xf32>
    %cst_13 = arith.constant dense<0.000000e+00> : vector<8xf32>
    %44 = vector.multi_reduction <add>, %43, %cst_13 [1] : vector<8x8xf32> to vector<8xf32>
    %45 = vector.shape_cast %44 : vector<8xf32> to vector<8x1xf32>
    %46 = tpu.reciprocal %45 {approx = true} : vector<8x1xf32> -> vector<8x1xf32>
    %47 = arith.mulf %45, %46 : vector<8x1xf32>
    %cst_14 = arith.constant 2.000000e+00 : f32
    %48 = vector.broadcast %cst_14 : f32 to vector<8x1xf32>
    %49 = arith.subf %48, %47 : vector<8x1xf32>
    %50 = arith.mulf %46, %49 : vector<8x1xf32>
    %51 = vector.broadcast %50 : vector<8x1xf32> to vector<8x8xf32>
    %52 = arith.mulf %43, %51 : vector<8x8xf32>
    %cst_15 = arith.constant dense<0.000000e+00> : vector<8x128xf32>
    %53 = tpu.matmul %52, %35, %cst_15 {dimension_numbers = #tpu.dot_dimension_numbers<[1], [0], [0], [1], [0, 0, 1, 1], [], []>} : vector<8x8xf32>, vector<8x128xf32>, vector<8x128xf32> -> vector<8x128xf32>
    %54 = vector.extract_strided_slice %32 {offsets = [0, 128], sizes = [8, 128], strides = [1, 1]} : vector<16x768xf32> to vector<8x128xf32>
    %55 = vector.extract_strided_slice %32 {offsets = [0, 384], sizes = [8, 128], strides = [1, 1]} : vector<16x768xf32> to vector<8x128xf32>
    %56 = vector.extract_strided_slice %32 {offsets = [0, 640], sizes = [8, 128], strides = [1, 1]} : vector<16x768xf32> to vector<8x128xf32>
    %cst_16 = arith.constant dense<0.000000e+00> : vector<8x8xf32>
    %57 = tpu.matmul %54, %55, %cst_16 {dimension_numbers = #tpu.dot_dimension_numbers<[1], [1], [0], [0], [0, 0, 1, 0], [], []>} : vector<8x128xf32>, vector<8x128xf32>, vector<8x8xf32> -> vector<8x8xf32>
    %cst_17 = arith.constant 0.176776692 : f32
    %58 = vector.broadcast %cst_17 : f32 to vector<8x8xf32>
    %59 = arith.mulf %57, %58 : vector<8x8xf32>
    %cst_18 = arith.constant dense<0xFF800000> : vector<8xf32>
    %60 = vector.multi_reduction <maximumf>, %59, %cst_18 [1] : vector<8x8xf32> to vector<8xf32>
    %61 = vector.shape_cast %60 : vector<8xf32> to vector<8x1xf32>
    %62 = vector.broadcast %61 : vector<8x1xf32> to vector<8x8xf32>
    %63 = arith.subf %59, %62 : vector<8x8xf32>
    %64 = math.exp %63 : vector<8x8xf32>
    %cst_19 = arith.constant dense<0.000000e+00> : vector<8xf32>
    %65 = vector.multi_reduction <add>, %64, %cst_19 [1] : vector<8x8xf32> to vector<8xf32>
    %66 = vector.shape_cast %65 : vector<8xf32> to vector<8x1xf32>
    %67 = tpu.reciprocal %66 {approx = true} : vector<8x1xf32> -> vector<8x1xf32>
    %68 = arith.mulf %66, %67 : vector<8x1xf32>
    %cst_20 = arith.constant 2.000000e+00 : f32
    %69 = vector.broadcast %cst_20 : f32 to vector<8x1xf32>
    %70 = arith.subf %69, %68 : vector<8x1xf32>
    %71 = arith.mulf %67, %70 : vector<8x1xf32>
    %72 = vector.broadcast %71 : vector<8x1xf32> to vector<8x8xf32>
    %73 = arith.mulf %64, %72 : vector<8x8xf32>
    %cst_21 = arith.constant dense<0.000000e+00> : vector<8x128xf32>
    %74 = tpu.matmul %73, %56, %cst_21 {dimension_numbers = #tpu.dot_dimension_numbers<[1], [0], [0], [1], [0, 0, 1, 1], [], []>} : vector<8x8xf32>, vector<8x128xf32>, vector<8x128xf32> -> vector<8x128xf32>
    %75 = tpu.concatenate %52, %73 in 1 : vector<8x8xf32>, vector<8x8xf32> -> vector<8x16xf32>
    %76 = tpu.concatenate %53, %74 in 1 : vector<8x128xf32>, vector<8x128xf32> -> vector<8x256xf32>
    %77 = vector.extract_strided_slice %32 {offsets = [8, 0], sizes = [8, 128], strides = [1, 1]} : vector<16x768xf32> to vector<8x128xf32>
    %78 = vector.extract_strided_slice %32 {offsets = [8, 256], sizes = [8, 128], strides = [1, 1]} : vector<16x768xf32> to vector<8x128xf32>
    %79 = vector.extract_strided_slice %32 {offsets = [8, 512], sizes = [8, 128], strides = [1, 1]} : vector<16x768xf32> to vector<8x128xf32>
    %cst_22 = arith.constant dense<0.000000e+00> : vector<8x8xf32>
    %80 = tpu.matmul %77, %78, %cst_22 {dimension_numbers = #tpu.dot_dimension_numbers<[1], [1], [0], [0], [0, 0, 1, 0], [], []>} : vector<8x128xf32>, vector<8x128xf32>, vector<8x8xf32> -> vector<8x8xf32>
    %cst_23 = arith.constant 0.176776692 : f32
    %81 = vector.broadcast %cst_23 : f32 to vector<8x8xf32>
    %82 = arith.mulf %80, %81 : vector<8x8xf32>
    %cst_24 = arith.constant dense<0xFF800000> : vector<8xf32>
    %83 = vector.multi_reduction <maximumf>, %82, %cst_24 [1] : vector<8x8xf32> to vector<8xf32>
    %84 = vector.shape_cast %83 : vector<8xf32> to vector<8x1xf32>
    %85 = vector.broadcast %84 : vector<8x1xf32> to vector<8x8xf32>
    %86 = arith.subf %82, %85 : vector<8x8xf32>
    %87 = math.exp %86 : vector<8x8xf32>
    %cst_25 = arith.constant dense<0.000000e+00> : vector<8xf32>
    %88 = vector.multi_reduction <add>, %87, %cst_25 [1] : vector<8x8xf32> to vector<8xf32>
    %89 = vector.shape_cast %88 : vector<8xf32> to vector<8x1xf32>
    %90 = tpu.reciprocal %89 {approx = true} : vector<8x1xf32> -> vector<8x1xf32>
    %91 = arith.mulf %89, %90 : vector<8x1xf32>
    %cst_26 = arith.constant 2.000000e+00 : f32
    %92 = vector.broadcast %cst_26 : f32 to vector<8x1xf32>
    %93 = arith.subf %92, %91 : vector<8x1xf32>
    %94 = arith.mulf %90, %93 : vector<8x1xf32>
    %95 = vector.broadcast %94 : vector<8x1xf32> to vector<8x8xf32>
    %96 = arith.mulf %87, %95 : vector<8x8xf32>
    %cst_27 = arith.constant dense<0.000000e+00> : vector<8x128xf32>
    %97 = tpu.matmul %96, %79, %cst_27 {dimension_numbers = #tpu.dot_dimension_numbers<[1], [0], [0], [1], [0, 0, 1, 1], [], []>} : vector<8x8xf32>, vector<8x128xf32>, vector<8x128xf32> -> vector<8x128xf32>
    %98 = vector.extract_strided_slice %32 {offsets = [8, 128], sizes = [8, 128], strides = [1, 1]} : vector<16x768xf32> to vector<8x128xf32>
    %99 = vector.extract_strided_slice %32 {offsets = [8, 384], sizes = [8, 128], strides = [1, 1]} : vector<16x768xf32> to vector<8x128xf32>
    %100 = vector.extract_strided_slice %32 {offsets = [8, 640], sizes = [8, 128], strides = [1, 1]} : vector<16x768xf32> to vector<8x128xf32>
    %cst_28 = arith.constant dense<0.000000e+00> : vector<8x8xf32>
    %101 = tpu.matmul %98, %99, %cst_28 {dimension_numbers = #tpu.dot_dimension_numbers<[1], [1], [0], [0], [0, 0, 1, 0], [], []>} : vector<8x128xf32>, vector<8x128xf32>, vector<8x8xf32> -> vector<8x8xf32>
    %cst_29 = arith.constant 0.176776692 : f32
    %102 = vector.broadcast %cst_29 : f32 to vector<8x8xf32>
    %103 = arith.mulf %101, %102 : vector<8x8xf32>
    %cst_30 = arith.constant dense<0xFF800000> : vector<8xf32>
    %104 = vector.multi_reduction <maximumf>, %103, %cst_30 [1] : vector<8x8xf32> to vector<8xf32>
    %105 = vector.shape_cast %104 : vector<8xf32> to vector<8x1xf32>
    %106 = vector.broadcast %105 : vector<8x1xf32> to vector<8x8xf32>
    %107 = arith.subf %103, %106 : vector<8x8xf32>
    %108 = math.exp %107 : vector<8x8xf32>
    %cst_31 = arith.constant dense<0.000000e+00> : vector<8xf32>
    %109 = vector.multi_reduction <add>, %108, %cst_31 [1] : vector<8x8xf32> to vector<8xf32>
    %110 = vector.shape_cast %109 : vector<8xf32> to vector<8x1xf32>
    %111 = tpu.reciprocal %110 {approx = true} : vector<8x1xf32> -> vector<8x1xf32>
    %112 = arith.mulf %110, %111 : vector<8x1xf32>
    %cst_32 = arith.constant 2.000000e+00 : f32
    %113 = vector.broadcast %cst_32 : f32 to vector<8x1xf32>
    %114 = arith.subf %113, %112 : vector<8x1xf32>
    %115 = arith.mulf %111, %114 : vector<8x1xf32>
    %116 = vector.broadcast %115 : vector<8x1xf32> to vector<8x8xf32>
    %117 = arith.mulf %108, %116 : vector<8x8xf32>
    %cst_33 = arith.constant dense<0.000000e+00> : vector<8x128xf32>
    %118 = tpu.matmul %117, %100, %cst_33 {dimension_numbers = #tpu.dot_dimension_numbers<[1], [0], [0], [1], [0, 0, 1, 1], [], []>} : vector<8x8xf32>, vector<8x128xf32>, vector<8x128xf32> -> vector<8x128xf32>
    %119 = tpu.concatenate %96, %117 in 1 : vector<8x8xf32>, vector<8x8xf32> -> vector<8x16xf32>
    %120 = tpu.concatenate %97, %118 in 1 : vector<8x128xf32>, vector<8x128xf32> -> vector<8x256xf32>
    %121 = tpu.concatenate %75, %119 in 0 : vector<8x16xf32>, vector<8x16xf32> -> vector<16x16xf32>
    %122 = tpu.concatenate %76, %120 in 0 : vector<8x256xf32>, vector<8x256xf32> -> vector<16x256xf32>
    %c0_34 = arith.constant 0 : index
    %c0_35 = arith.constant 0 : index
    %123 = vector.load %arg3[%c0_34, %c0_35] : memref<256x32xf32, #tpu.memory_space<vmem>>, vector<256x32xf32>
    %cst_36 = arith.constant dense<0.000000e+00> : vector<16x32xf32>
    %124 = tpu.matmul %122, %123, %cst_36 {dimension_numbers = #tpu.dot_dimension_numbers<[1], [0], [0], [1], [0, 0, 1, 1], [], []>} : vector<16x256xf32>, vector<256x32xf32>, vector<16x32xf32> -> vector<16x32xf32>
    %125 = vector.broadcast %2 : vector<1x32xf32> to vector<16x32xf32>
    %126 = arith.addf %124, %125 : vector<16x32xf32>
    %127 = arith.addf %126, %30 : vector<16x32xf32>
    %cst_37 = arith.constant dense<0.000000e+00> : vector<16xf32>
    %128 = vector.multi_reduction <add>, %127, %cst_37 [1] : vector<16x32xf32> to vector<16xf32>
    %129 = vector.shape_cast %128 : vector<16xf32> to vector<16x1xf32>
    %cst_38 = arith.constant 3.200000e+01 : f32
    %130 = vector.broadcast %cst_38 : f32 to vector<16x1xf32>
    %131 = arith.divf %129, %130 : vector<16x1xf32>
    %132 = vector.broadcast %131 : vector<16x1xf32> to vector<16x32xf32>
    %133 = arith.subf %127, %132 : vector<16x32xf32>
    %134 = arith.mulf %133, %133 : vector<16x32xf32>
    %cst_39 = arith.constant dense<0.000000e+00> : vector<16xf32>
    %135 = vector.multi_reduction <add>, %134, %cst_39 [1] : vector<16x32xf32> to vector<16xf32>
    %136 = vector.shape_cast %135 : vector<16xf32> to vector<16x1xf32>
    %cst_40 = arith.constant 3.200000e+01 : f32
    %137 = vector.broadcast %cst_40 : f32 to vector<16x1xf32>
    %138 = arith.divf %136, %137 : vector<16x1xf32>
    %139 = vector.broadcast %131 : vector<16x1xf32> to vector<16x32xf32>
    %140 = arith.subf %127, %139 : vector<16x32xf32>
    %cst_41 = arith.constant 9.99999974E-6 : f32
    %141 = vector.broadcast %cst_41 : f32 to vector<16x1xf32>
    %142 = arith.addf %138, %141 : vector<16x1xf32>
    %143 = math.rsqrt %142 : vector<16x1xf32>
    %144 = vector.broadcast %143 : vector<16x1xf32> to vector<16x32xf32>
    %145 = arith.mulf %140, %144 : vector<16x32xf32>
    %146 = vector.broadcast %7 : vector<1x32xf32> to vector<16x32xf32>
    %147 = arith.mulf %145, %146 : vector<16x32xf32>
    %148 = vector.broadcast %8 : vector<1x32xf32> to vector<16x32xf32>
    %149 = arith.addf %147, %148 : vector<16x32xf32>
    %c0_42 = arith.constant 0 : index
    %c0_43 = arith.constant 0 : index
    %150 = vector.load %arg4[%c0_42, %c0_43] : memref<32x64xf32, #tpu.memory_space<vmem>>, vector<32x64xf32>
    %cst_44 = arith.constant dense<0.000000e+00> : vector<16x64xf32>
    %151 = tpu.matmul %149, %150, %cst_44 {dimension_numbers = #tpu.dot_dimension_numbers<[1], [0], [0], [1], [0, 0, 1, 1], [], []>} : vector<16x32xf32>, vector<32x64xf32>, vector<16x64xf32> -> vector<16x64xf32>
    %152 = vector.broadcast %5 : vector<1x64xf32> to vector<16x64xf32>
    %153 = arith.addf %151, %152 : vector<16x64xf32>
    %cst_45 = arith.constant 5.000000e-01 : f32
    %154 = vector.broadcast %cst_45 : f32 to vector<16x64xf32>
    %155 = arith.mulf %153, %154 : vector<16x64xf32>
    %cst_46 = arith.constant 0.707106769 : f32
    %156 = vector.broadcast %cst_46 : f32 to vector<16x64xf32>
    %157 = arith.mulf %153, %156 : vector<16x64xf32>
    %158 = math.erf %157 : vector<16x64xf32>
    %cst_47 = arith.constant 1.000000e+00 : f32
    %159 = vector.broadcast %cst_47 : f32 to vector<16x64xf32>
    %160 = arith.addf %159, %158 : vector<16x64xf32>
    %161 = arith.mulf %155, %160 : vector<16x64xf32>
    %c0_48 = arith.constant 0 : index
    %c0_49 = arith.constant 0 : index
    %162 = vector.load %arg5[%c0_48, %c0_49] : memref<64x32xf32, #tpu.memory_space<vmem>>, vector<64x32xf32>
    %cst_50 = arith.constant dense<0.000000e+00> : vector<16x32xf32>
    %163 = tpu.matmul %161, %162, %cst_50 {dimension_numbers = #tpu.dot_dimension_numbers<[1], [0], [0], [1], [0, 0, 1, 1], [], []>} : vector<16x64xf32>, vector<64x32xf32>, vector<16x32xf32> -> vector<16x32xf32>
    %164 = vector.broadcast %6 : vector<1x32xf32> to vector<16x32xf32>
    %165 = arith.addf %163, %164 : vector<16x32xf32>
    %166 = arith.addf %165, %149 : vector<16x32xf32>
    %167 = vector.extract_strided_slice %32 {offsets = [0, 256], sizes = [16, 32], strides = [1, 1]} : vector<16x768xf32> to vector<16x32xf32>
    %168 = vector.extract_strided_slice %32 {offsets = [0, 384], sizes = [16, 32], strides = [1, 1]} : vector<16x768xf32> to vector<16x32xf32>
    %169 = tpu.concatenate %167, %168 in 1 : vector<16x32xf32>, vector<16x32xf32> -> vector<16x64xf32>
    %cst_51 = arith.constant 0.000000e+00 : f32
    %170 = vector.broadcast %cst_51 : f32 to vector<16x16xf32>
    %171 = tpu.concatenate %166, %121, %169, %170 in 1 : vector<16x32xf32>, vector<16x16xf32>, vector<16x64xf32>, vector<16x16xf32> -> vector<16x128xf32>
    %c0_52 = arith.constant 0 : index
    %c0_53 = arith.constant 0 : index
    %172 = vector.load %arg7[%c0_52, %c0_53] : memref<16x128xf32, #tpu.memory_space<vmem>>, vector<16x128xf32>
    tpu.vector_store %arg7[%c0_52, %c0_53], %171 {strides = array<i32>} : memref<16x128xf32, #tpu.memory_space<vmem>>, vector<16x128xf32>,
    return
  }
  func.func @transform_0(%arg0: i32) -> (i32, i32) {
    %c0_i32 = arith.constant 0 : i32
    %c0_i32_0 = arith.constant 0 : i32
    %c0_i32_1 = arith.constant 0 : i32
    return %c0_i32, %c0_i32_0 : i32, i32
  }
  func.func @transform_1(%arg0: i32) -> (i32, i32) {
    %c0_i32 = arith.constant 0 : i32
    %c0_i32_0 = arith.constant 0 : i32
    %c0_i32_1 = arith.constant 0 : i32
    return %c0_i32, %c0_i32_0 : i32, i32
  }
  func.func @transform_2(%arg0: i32) -> (i32, i32) {
    %c0_i32 = arith.constant 0 : i32
    %c0_i32_0 = arith.constant 0 : i32
    %c0_i32_1 = arith.constant 0 : i32
    return %c0_i32, %c0_i32_0 : i32, i32
  }
  func.func @transform_3(%arg0: i32) -> (i32, i32) {
    %c0_i32 = arith.constant 0 : i32
    %c0_i32_0 = arith.constant 0 : i32
    %c0_i32_1 = arith.constant 0 : i32
    return %c0_i32, %c0_i32_0 : i32, i32
  }
  func.func @transform_4(%arg0: i32) -> (i32, i32) {
    %c0_i32 = arith.constant 0 : i32
    %c0_i32_0 = arith.constant 0 : i32
    %c0_i32_1 = arith.constant 0 : i32
    return %c0_i32, %c0_i32_0 : i32, i32
  }
  func.func @transform_5(%arg0: i32) -> (i32, i32) {
    %c0_i32 = arith.constant 0 : i32
    %c0_i32_0 = arith.constant 0 : i32
    %c0_i32_1 = arith.constant 0 : i32
    return %c0_i32, %c0_i32_0 : i32, i32
  }
  func.func @transform_6(%arg0: i32) -> (i32, i32) {
    %c0_i32 = arith.constant 0 : i32
    %c0_i32_0 = arith.constant 0 : i32
    %c0_i32_1 = arith.constant 0 : i32
    return %c0_i32, %c0_i32_0 : i32, i32
  }
}

</mosaic_0001>

<bundles_post_ra>
// kernel: encoder_block.1
= control target key start
LH: loop header
LB: loop body
LE: loop exit
PB: predicated region body
PF: predicated region fallthrough
CT: control target
= control target key end

     0   :  { %vm26_vm0 = vcmask 261120   ;;  %v1621_v17 = vmov 0.0   ;;  %v54_v44 = vlaneseq  ;;  %vm1622_vm1 = vmmov 0   ;;  %s1624_s8 = smov 32   ;;  %s2037_s0 = inlined_call_operand.vmem [shape: f32[16,32], index: 0, kind: input, shape index: {}]   ;;  %s2038_s1 = inlined_call_operand.vmem [shape: f32[32,768], index: 1, kind: input, shape index: {}]   ;;  %s2039_s5 = inlined_call_operand.vmem [shape: f32[8,128], index: 5, kind: input, shape index: {}]   ;;  %s2040_s2 = inlined_call_operand.vmem [shape: f32[256,32], index: 2, kind: input, shape index: {}]   ;;  %s2041_s3 = inlined_call_operand.vmem [shape: f32[32,64], index: 3, kind: input, shape index: {}]   ;;  %s2042_s4 = inlined_call_operand.vmem [shape: f32[64,32], index: 4, kind: input, shape index: {}]   ;;  %s2043_s6 = inlined_call_operand.vmem [shape: f32[16,128], index: 6, kind: output, shape index: {}]  }
   0x1   :  { %v23_v0 = vld [vmem:[%s2037_s0] sm:$0xff]  ;;  %v24_v1 = vld [vmem:[%s2037_s0 + $0x8] sm:$0xff]  ;;  %v73_v15 = vld [vmem:[%s2038_s1 + $0x38] sm:$0xff]  ;;  %160 = vmatprep.mubr.f32.mxu1 %v1621_v17  ;;  %314 = vmatprep.mubr.f32.mxu0 %v1621_v17  ;;  %vm398_vm2 = vcmask 64512   ;;  %vm1230_vm3 = vcmask 523264   ;;  %vm1342_vm4 = vcmask 392192  }
   0x2   :  { %v27_v2 = vsel %vm26_vm0, %v23_v0, 0.0  ;;  %v30_v3 = vsel %vm26_vm0, %v24_v1, 0.0  ;;  %v67_v14 = vld [vmem:[%s2038_s1 + $0x8] sm:$0xff]  ;;  %v77_v19 = vld [vmem:[%s2038_s1 + $0x58] sm:$0xff]  ;;  %v66_v20 = vld [vmem:[%s2038_s1] sm:$0xff]  ;;  %v1736_v48 = vshrl.u32 %v54_v44, 7 }
   0x3   :  { %28 = vadd.xlane.f32.xlu0 %v27_v2  ;;  %v71_v16 = vld [vmem:[%s2038_s1 + $0x28] sm:$0xff]  ;;  %v1508_v18 = vpack.c.bf16 %v73_v15, %v67_v14  ;;  %v72_v21 = vld [vmem:[%s2038_s1 + $0x30] sm:$0xff]  ;;  %v70_v24 = vld [vmem:[%s2038_s1 + $0x20] sm:$0xff]  ;;  %vm1345_vm5 = vcmask 916480  }
   0x4   :  { %v1524_v22 = vpack.c.bf16 %v77_v19, %v71_v16  ;;  %v1510_v23 = vpack.c.bf16 %v72_v21, %v66_v20  ;;  %v76_v25 = vld [vmem:[%s2038_s1 + $0x50] sm:$0xff]  ;;  %v79_v26 = vld [vmem:[%s2038_s1 + $0x68] sm:$0xff]  ;;  %v85_v28 = vld [vmem:[%s2038_s1 + $0x98] sm:$0xff]  ;;  %v56_v50 = vsub.s32 1, %v1736_v48  ;;  %v62_v52 = vsub.s32 2, %v1736_v48 }
   0x5   :  { %1509 = vmatprep.subr.bf16.mxu1 %v1508_v18  ;;  %v1526_v27 = vpack.c.bf16 %v76_v25, %v70_v24  ;;  %v83_v29 = vld [vmem:[%s2038_s1 + $0x88] sm:$0xff]  ;;  %v89_v30 = vld [vmem:[%s2038_s1 + $0xb8] sm:$0xff]  ;;  %v1512_v31 = vpack.c.bf16 %v85_v28, %v79_v26  ;;  %v78_v33 = vld [vmem:[%s2038_s1 + $0x60] sm:$0xff] }
   0x6   :  { %1525 = vmatprep.subr.bf16.mxu0 %v1524_v22  ;;  %1511 = vmatpush1.bf16.msra.mxu1 %v1510_v23  ;;  %v1528_v32 = vpack.c.bf16 %v89_v30, %v83_v29  ;;  %v84_v34 = vld [vmem:[%s2038_s1 + $0x90] sm:$0xff]  ;;  %v82_v35 = vld [vmem:[%s2038_s1 + $0x80] sm:$0xff]  ;;  %v69_v39 = vld [vmem:[%s2038_s1 + $0x18] sm:$0xff] }
   0x7   :  { %31 = vadd.xlane.f32.xlu0 %v30_v3  ;;  %1527 = vmatpush1.bf16.msra.mxu0 %v1526_v27  ;;  %v1514_v36 = vpack.c.bf16 %v84_v34, %v78_v33  ;;  %v88_v37 = vld [vmem:[%s2038_s1 + $0xb0] sm:$0xff]  ;;  %v75_v40 = vld [vmem:[%s2038_s1 + $0x48] sm:$0xff]  ;;  %v1742_v51 = vld [vmem:[%s2039_s5] sm:$0xff] }
   0x8   :  { %1513 = vmatprep.subr.bf16.mxu1 %v1512_v31  ;;  %1529 = vmatprep.subr.bf16.mxu0 %v1528_v32  ;;  %v1530_v38 = vpack.c.bf16 %v88_v37, %v82_v35  ;;  %v1516_v41 = vpack.c.bf16 %v75_v40, %v69_v39  ;;  %v57_v53 = vrot.slane %v1742_v51, %v56_v50  ;;  %v68_v57 = vld [vmem:[%s2038_s1 + $0x10] sm:$0xff]  ;;  %v74_v58 = vld [vmem:[%s2038_s1 + $0x40] sm:$0xff]  ;;  %v81_v59 = vld [vmem:[%s2038_s1 + $0x78] sm:$0xff] }
   0x9   :  { %v63_v56 = vrot.slane %v1742_v51, %v62_v52  ;;  %v87_v60 = vld [vmem:[%s2038_s1 + $0xa8] sm:$0xff]  ;;  %v1518_v63 = vpack.c.bf16 %v74_v58, %v68_v57  ;;  %v80_v3 = vld [vmem:[%s2038_s1 + $0x70] sm:$0xff] }
   0xa   :  { %1515 = vmatpush1.bf16.msra.mxu1 %v1514_v36  ;;  %v1520_v2 = vpack.c.bf16 %v87_v60, %v81_v59  ;;  %v984_v59 = vld [vmem:[%s2040_s2 + $0x80] sm:$0xff]  ;;  %v985_v60 = vld [vmem:[%s2040_s2 + $0x88] sm:$0xff] }
   0xb   :  { %1531 = vmatpush1.bf16.msra.mxu0 %v1530_v38  ;;  %1517 = vmatprep.subr.bf16.mxu1 %v1516_v41 }
   0xc   :  { %1448 = vmatprep.subr.mxu0 %v1621_v17 }
  0x90   :  { %v29_v4 = vpop.xlane.xlu0 %28 }
  0x91   :  { %v34_v5 = vmul.f32 0.03125, %v29_v4  ;;  %v86_v4 = vld [vmem:[%s2038_s1 + $0xa0] sm:$0xff] }
  0x93   :  { %v1669_v6 = vsub.f32 %v23_v0, %v34_v5 }
  0x94   :  { %v32_v7 = vpop.xlane.xlu0 %31 }
  0x95   :  { %v35_v8 = vmul.f32 0.03125, %v32_v7  ;;  %v38_v9 = vmul.f32 %v1669_v6, %v1669_v6 }
  0x97   :  { %v1673_v10 = vsub.f32 %v24_v1, %v35_v8  ;;  %v40_v11 = vsel %vm26_vm0, %v38_v9, 0.0 }
  0x98   :  { %41 = vadd.xlane.f32.xlu1 %v40_v11 }
  0x99   :  { %v39_v12 = vmul.f32 %v1673_v10, %v1673_v10 }
  0x9b   :  { %v43_v13 = vsel %vm26_vm0, %v39_v12, 0.0 }
  0x9c   :  { %44 = vadd.xlane.f32.xlu1 %v43_v13 }
 0x125   :  { %v42_v42 = vpop.xlane.xlu1 %41 }
 0x126   :  { %v46_v43 = vmul.f32 0.03125, %v42_v42 }
 0x128   :  { %v48_v45 = vadd.f32 1e-05, %v46_v43 }
 0x129   :  { %v45_v46 = vpop.xlane.xlu1 %44 }
 0x12a   :  { %1593 = vrsqrt.f32 %v48_v45  ;;  %v47_v47 = vmul.f32 0.03125, %v45_v46 }
 0x12c   :  { %v49_v49 = vadd.f32 1e-05, %v47_v47 }
 0x12e   :  { %1595 = vrsqrt.f32 %v49_v49 }
 0x134   :  { %v1594_v54 = vpop.eup %1593 }
 0x135   :  { %v52_v55 = vmul.f32 %v1594_v54, %v1669_v6  ;;  %v1522_v6 = vpack.c.bf16 %v86_v4, %v80_v3 }
 0x137   :  { %v58_v61 = vmul.f32 %v57_v53, %v52_v55 }
 0x138   :  { %v1596_v62 = vpop.eup %1595 }
 0x139   :  { %v1760_v0 = vadd.f32 %v63_v56, %v58_v61  ;;  %v53_v1 = vmul.f32 %v1596_v62, %v1673_v10  ;;  %v968_v61 = vld [vmem:[%s2040_s2] sm:$0xff]  ;;  %v1532_v62 = vpack.c.bf16 %v985_v60, %v984_v59 }
 0x13b   :  { %1354 = vmatmul.mubr.msk.f32.vlgmr.msra.gmra.mrb[0].mxu1 %vm26_vm0, %v1760_v0  ;;  %1358 = vmatmul.mubr.msk.f32.vlgmr.msra.gmra.mrb[0].mxu0 %vm26_vm0, %v1760_v0  ;;  %v59_v5 = vmul.f32 %v57_v53, %v53_v1  ;;  %v986_v1 = vld [vmem:[%s2040_s2 + $0x90] sm:$0xff] }
 0x13c   :  { %1519 = vmatpush1.bf16.msra.mxu1 %v1518_v63  ;;  %166 = vmatprep.mubr.f32.mxu1 %v1621_v17  ;;  %v969_v63 = vld [vmem:[%s2040_s2 + $0x8] sm:$0xff] }
 0x13d   :  { %320 = vmatprep.mubr.f32.mxu0 %v1621_v17  ;;  %v1775_v7 = vadd.f32 %v63_v56, %v59_v5  ;;  %1521 = vmatprep.subr.bf16.mxu1 %v1520_v2  ;;  %v987_v2 = vld [vmem:[%s2040_s2 + $0x98] sm:$0xff]  ;;  %v1534_v3 = vpack.c.bf16 %v969_v63, %v968_v61  ;;  %v970_v5 = vld [vmem:[%s2040_s2 + $0x10] sm:$0xff] }
 0x13e   :  { %v1536_v4 = vpack.c.bf16 %v987_v2, %v986_v1 }
 0x13f   :  { %1355 = vmatmul.mubr.msk.f32.gmra.mrb[2].mxu1 %vm26_vm0, %v1775_v7  ;;  %1359 = vmatmul.mubr.msk.f32.gmra.mrb[2].mxu0 %vm26_vm0, %v1775_v7 }
 0x140   :  { %1523 = vmatpush1.bf16.msra.mxu1 %v1522_v6  ;;  %237 = vmatprep.mubr.f32.mxu1 %v1621_v17  ;;  %v971_v6 = vld [vmem:[%s2040_s2 + $0x18] sm:$0xff] }
 0x141   :  { %1438 = vmatprep.subr.mxu1 %v1621_v17  ;;  %1450 = vmatprep.mubr.msk.f32.mxu0 %vm1622_vm1, %v1621_v17 }
 0x143   :  { %1356 = vmatmul.mubr.msk.f32.vlgmr.msra.gmra.mrb[4].mxu1 %vm26_vm0, %v1760_v0 }
 0x144   :  { %243 = vmatprep.mubr.f32.mxu1 %v1621_v17 }
 0x147   :  { %1357 = vmatmul.mubr.msk.f32.gmra.mrb[6].mxu1 %vm26_vm0, %v1775_v7 }
 0x148   :  { %1440 = vmatprep.mubr.msk.f32.mxu1 %vm1622_vm1, %v1621_v17 }
 0x20e   :  { %v162_v8 = vpop.f32.mrb[0].mxu1  ;;  %v316_v9 = vpop.f32.mrb[0].mxu0 }
 0x20f   :  { %v164_v10 = vpop.f32.mrb[1].mxu1  ;;  %v1792_v11 = vpop.f32.mrb[1].mxu0 }
 0x212   :  { %v168_v12 = vpop.f32.mrb[2].mxu1  ;;  %v1794_v13 = vpop.f32.mrb[2].mxu0 }
 0x213   :  { %v170_v14 = vpop.f32.mrb[3].mxu1  ;;  %v1796_v15 = vpop.f32.mrb[3].mxu0 }
 0x216   :  { %v1798_v16 = vpop.f32.mrb[4].mxu1 }
 0x217   :  { %v1800_v18 = vpop.f32.mrb[5].mxu1  ;;  %1439 = vmatpush3.xpose.msra.mxu1 %v1798_v16 }
 0x218   :  { %1449 = vmatpush3.xpose.msra.mxu0 %v1800_v18  ;;  %1443 = vmatprep.subr.mxu1 %v1621_v17 }
 0x219   :  { %1458 = vmatprep.subr.mxu0 %v1621_v17 }
 0x21a   :  { %v1806_v19 = vpop.f32.mrb[6].mxu1  ;;  %1441 = vmatmul.mubr.f32.vlgmr.msra.gmra.mrb[8].mxu1 %v162_v8  ;;  %v988_v8 = vld [vmem:[%s2040_s2 + $0xa0] sm:$0xff] }
 0x21b   :  { %v1808_v20 = vpop.f32.mrb[7].mxu1  ;;  %1444 = vmatpush3.msra.mxu1 %v316_v9  ;;  %1451 = vmatmul.mubr.f32.vlgmr.msra.gmra.mrb[4].mxu0 %v164_v10  ;;  %v989_v9 = vld [vmem:[%s2040_s2 + $0xa8] sm:$0xff]  ;;  %v1538_v10 = vpack.c.bf16 %v971_v6, %v970_v5 }
 0x21c   :  { %1459 = vmatpush3.xpose.msra.mxu0 %v1806_v19  ;;  %1460 = vmatprep.mubr.msk.f32.mxu0 %vm1622_vm1, %v1621_v17 }
 0x21d   :  { %1468 = vmatprep.subr.mxu0 %v1621_v17  ;;  %1445 = vmatprep.mubr.msk.f32.mxu1 %vm1622_vm1, %v1621_v17 }
 0x21e   :  { %1453 = vmatprep.subr.mxu1 %v1621_v17 }
 0x21f   :  { %1461 = vmatmul.mubr.f32.vlgmr.msra.gmra.mrb[6].mxu0 %v168_v12  ;;  %v1540_v12 = vpack.c.bf16 %v989_v9, %v988_v8 }
 0x220   :  { %1469 = vmatpush3.xpose.msra.mxu0 %v1808_v20  ;;  %1470 = vmatprep.mubr.msk.f32.mxu0 %vm1622_vm1, %v1621_v17 }
 0x221   :  { %1533 = vmatprep.subr.bf16.mxu0 %v1532_v62 }
 0x223   :  { %1471 = vmatmul.mubr.f32.vlgmr.msra.gmra.mrb[8].mxu0 %v170_v14  ;;  %v972_v14 = vld [vmem:[%s2040_s2 + $0x20] sm:$0xff] }
 0x224   :  { %1535 = vmatpush3.bf16.msra.mxu0 %v1534_v3 }
 0x225   :  { %1537 = vmatprep.subr.bf16.mxu0 %v1536_v4 }
 0x228   :  { %1539 = vmatpush3.bf16.msra.mxu0 %v1538_v10 }
 0x229   :  { %1541 = vmatprep.subr.bf16.mxu0 %v1540_v12 }
 0x2ed   :  { %v393_v21 = vpop.f32.mrb[8].mxu1 }
 0x2ee   :  { %v397_v22 = vmul.f32 0.17677669, %v393_v21  ;;  %v1442_v23 = vpop.f32.mrb[9].mxu1  ;;  %v552_v24 = vpop.f32.mrb[4].mxu0  ;;  %v973_v21 = vld [vmem:[%s2040_s2 + $0x28] sm:$0xff] }
 0x2ef   :  { %v556_v25 = vmul.f32 0.17677669, %v552_v24  ;;  %v1452_v26 = vpop.f32.mrb[5].mxu0  ;;  %v991_v23 = vld [vmem:[%s2040_s2 + $0xb8] sm:$0xff]  ;;  %v1542_v24 = vpack.c.bf16 %v973_v21, %v972_v14 }
 0x2f0   :  { %v399_v27 = vsel %vm398_vm2, %v397_v22, -inf  ;;  %v974_v26 = vld [vmem:[%s2040_s2 + $0x30] sm:$0xff] }
 0x2f1   :  { %400 = vmax.xlane.f32.xlu0 %v399_v27  ;;  %v557_v28 = vsel %vm398_vm2, %v556_v25, -inf  ;;  %v975_v27 = vld [vmem:[%s2040_s2 + $0x38] sm:$0xff]  ;;  %1543 = vmatpush3.bf16.msra.mxu0 %v1542_v24 }
 0x2f2   :  { %558 = vmax.xlane.f32.xlu1 %v557_v28  ;;  %v714_v29 = vpop.f32.mrb[6].mxu0  ;;  %v992_v28 = vld [vmem:[%s2040_s2 + $0xc0] sm:$0xff] }
 0x2f3   :  { %v718_v30 = vmul.f32 0.17677669, %v714_v29  ;;  %v1462_v31 = vpop.f32.mrb[7].mxu0  ;;  %v993_v29 = vld [vmem:[%s2040_s2 + $0xc8] sm:$0xff] }
 0x2f4   :  { %v1548_v31 = vpack.c.bf16 %v993_v29, %v992_v28  ;;  %v1002_v29 = vsub.s32 0, %v1736_v48 }
 0x2f5   :  { %v719_v32 = vsel %vm398_vm2, %v718_v30, -inf }
 0x2f6   :  { %v872_v33 = vpop.f32.mrb[8].mxu0  ;;  %720 = vmax.xlane.f32.xlu0 %v719_v32  ;;  %v976_v32 = vld [vmem:[%s2040_s2 + $0x40] sm:$0xff] }
 0x2f7   :  { %v876_v34 = vmul.f32 0.17677669, %v872_v33  ;;  %v1472_v35 = vpop.f32.mrb[9].mxu0  ;;  %v977_v33 = vld [vmem:[%s2040_s2 + $0x48] sm:$0xff] }
 0x2f8   :  { %v995_v35 = vld [vmem:[%s2040_s2 + $0xd8] sm:$0xff] }
 0x2f9   :  { %v877_v36 = vsel %vm398_vm2, %v876_v34, -inf }
 0x2fa   :  { %878 = vmax.xlane.f32.xlu1 %v877_v36  ;;  %v1550_v36 = vpack.c.bf16 %v977_v33, %v976_v32 }
 0x37e   :  { %v401_v37 = vpop.xlane.xlu0 %400 }
 0x37f   :  { %v402_v38 = vsub.f32 %v397_v22, %v401_v37  ;;  %v559_v39 = vpop.xlane.xlu1 %558  ;;  %v990_v22 = vld [vmem:[%s2040_s2 + $0xb0] sm:$0xff] }
 0x380   :  { %v560_v40 = vsub.f32 %v556_v25, %v559_v39  ;;  %v1544_v25 = vpack.c.bf16 %v991_v23, %v990_v22  ;;  %v979_v39 = vld [vmem:[%s2040_s2 + $0x58] sm:$0xff] }
 0x381   :  { %v403_v41 = vmul.f32 1.442695, %v402_v38  ;;  %v978_v38 = vld [vmem:[%s2040_s2 + $0x50] sm:$0xff] }
 0x382   :  { %v561_v42 = vmul.f32 1.442695, %v560_v40  ;;  %1545 = vmatprep.subr.bf16.mxu0 %v1544_v25  ;;  %v996_v40 = vld [vmem:[%s2040_s2 + $0xe0] sm:$0xff] }
 0x383   :  { %1597 = vpow2.f32 %v403_v41  ;;  %v721_v43 = vpop.xlane.xlu0 %720  ;;  %v997_v41 = vld [vmem:[%s2040_s2 + $0xe8] sm:$0xff] }
 0x384   :  { %1599 = vpow2.f32 %v561_v42  ;;  %v722_v44 = vsub.f32 %v718_v30, %v721_v43  ;;  %v1546_v30 = vpack.c.bf16 %v975_v27, %v974_v26  ;;  %v1554_v42 = vpack.c.bf16 %v979_v39, %v978_v38 }
 0x385   :  { %v1556_v43 = vpack.c.bf16 %v997_v41, %v996_v40 }
 0x386   :  { %v723_v45 = vmul.f32 1.442695, %v722_v44  ;;  %1547 = vmatpush3.bf16.msra.mxu0 %v1546_v30  ;;  %v980_v44 = vld [vmem:[%s2040_s2 + $0x60] sm:$0xff] }
 0x387   :  { %v879_v46 = vpop.xlane.xlu1 %878  ;;  %1549 = vmatprep.subr.bf16.mxu0 %v1548_v31  ;;  %v1003_v31 = vrot.slane %v1742_v51, %v1002_v29  ;;  %v1222_v29 = vld [vmem:[%s2042_s4 + $0x20] sm:$0xff] }
 0x388   :  { %1601 = vpow2.f32 %v723_v45  ;;  %v880_v47 = vsub.f32 %v876_v34, %v879_v46  ;;  %v994_v34 = vld [vmem:[%s2040_s2 + $0xd0] sm:$0xff]  ;;  %v981_v45 = vld [vmem:[%s2040_s2 + $0x68] sm:$0xff] }
 0x389   :  { %v1552_v37 = vpack.c.bf16 %v995_v35, %v994_v34  ;;  %v1558_v46 = vpack.c.bf16 %v981_v45, %v980_v44 }
 0x38a   :  { %v881_v49 = vmul.f32 1.442695, %v880_v47  ;;  %1551 = vmatpush3.bf16.msra.mxu0 %v1550_v36 }
 0x38b   :  { %1553 = vmatprep.subr.bf16.mxu0 %v1552_v37 }
 0x38c   :  { %1603 = vpow2.f32 %v881_v49 }
 0x38d   :  { %v1824_v50 = vpop.eup %1597 }
 0x38e   :  { %v1826_v52 = vpop.eup %1599  ;;  %v405_v53 = vsel %vm398_vm2, %v1824_v50, 0.0  ;;  %1555 = vmatpush3.bf16.msra.mxu0 %v1554_v42 }
 0x38f   :  { %406 = vadd.xlane.f32.xlu0 %v405_v53  ;;  %v563_v54 = vsel %vm398_vm2, %v1826_v52, 0.0  ;;  %1557 = vmatprep.subr.bf16.mxu0 %v1556_v43 }
 0x390   :  { %564 = vadd.xlane.f32.xlu1 %v563_v54 }
 0x392   :  { %v1832_v55 = vpop.eup %1601  ;;  %1559 = vmatpush3.bf16.msra.mxu0 %v1558_v46 }
 0x393   :  { %v725_v56 = vsel %vm398_vm2, %v1832_v55, 0.0 }
 0x394   :  { %726 = vadd.xlane.f32.xlu0 %v725_v56 }
 0x396   :  { %v1836_v57 = vpop.eup %1603 }
 0x397   :  { %v883_v58 = vsel %vm398_vm2, %v1836_v57, 0.0 }
 0x398   :  { %884 = vadd.xlane.f32.xlu1 %v883_v58 }
 0x41c   :  { %v407_v47 = vpop.xlane.xlu0 %406 }
 0x41d   :  { %1605 = vrcp.f32 %v407_v47  ;;  %v565_v49 = vpop.xlane.xlu1 %564 }
 0x41e   :  { %1607 = vrcp.f32 %v565_v49 }
 0x421   :  { %v727_v53 = vpop.xlane.xlu0 %726 }
 0x422   :  { %1609 = vrcp.f32 %v727_v53 }
 0x425   :  { %v885_v54 = vpop.xlane.xlu1 %884 }
 0x426   :  { %1611 = vrcp.f32 %v885_v54 }
 0x427   :  { %v1606_v56 = vpop.eup %1605 }
 0x428   :  { %v1608_v58 = vpop.eup %1607  ;;  %v409_v59 = vmul.f32 %v1606_v56, %v407_v47 }
 0x429   :  { %v567_v60 = vmul.f32 %v1608_v58, %v565_v49 }
 0x42a   :  { %v410_v61 = vsub.f32 2.0, %v409_v59 }
 0x42b   :  { %v568_v62 = vsub.f32 2.0, %v567_v60  ;;  %v1121_v60 = vld [vmem:[%s2041_s3 + $0x10] sm:$0xff] }
 0x42c   :  { %v1610_v63 = vpop.eup %1609  ;;  %v411_v1 = vmul.f32 %v1606_v56, %v410_v61 }
 0x42d   :  { %v729_v2 = vmul.f32 %v1610_v63, %v727_v53  ;;  %v569_v4 = vmul.f32 %v1608_v58, %v568_v62  ;;  %v1120_v58 = vld [vmem:[%s2041_s3 + $0x8] sm:$0xff] }
 0x42e   :  { %v1925_v3 = vmul.f32 %v1824_v50, %v411_v1 }
 0x42f   :  { %v730_v5 = vsub.f32 2.0, %v729_v2  ;;  %v1933_v9 = vmul.f32 %v1826_v52, %v569_v4 }
 0x430   :  { %v1612_v6 = vpop.eup %1611  ;;  %1446 = vmatmul.mubr.msk.f32.vlgmr.msra.gmra.mrb[10].mxu1 %vm398_vm2, %v1925_v3 }
 0x431   :  { %v887_v8 = vmul.f32 %v1612_v6, %v885_v54  ;;  %1454 = vmatpush3.msra.mxu1 %v1792_v11  ;;  %1455 = vmatprep.mubr.msk.f32.mxu1 %vm1622_vm1, %v1621_v17  ;;  %v731_v10 = vmul.f32 %v1610_v63, %v730_v5 }
 0x432   :  { %1463 = vmatprep.subr.mxu1 %v1621_v17 }
 0x433   :  { %v888_v50 = vsub.f32 2.0, %v887_v8  ;;  %v1942_v11 = vmul.f32 %v1832_v55, %v731_v10  ;;  %v999_v55 = vld [vmem:[%s2040_s2 + $0xf8] sm:$0xff]  ;;  %v1115_v10 = vsub.s32 6, %v1736_v48 }
 0x434   :  { %1456 = vmatmul.mubr.msk.f32.vlgmr.msra.gmra.mrb[12].mxu1 %vm398_vm2, %v1933_v9 }
 0x435   :  { %1464 = vmatpush3.msra.mxu1 %v1794_v13  ;;  %1465 = vmatprep.mubr.msk.f32.mxu1 %vm1622_vm1, %v1621_v17  ;;  %v889_v12 = vmul.f32 %v1612_v6, %v888_v50  ;;  %v998_v13 = vld [vmem:[%s2040_s2 + $0xf0] sm:$0xff]  ;;  %v1109_v6 = vsub.s32 5, %v1736_v48 }
 0x436   :  { %1473 = vmatprep.subr.mxu1 %v1621_v17  ;;  %v1560_v14 = vpack.c.bf16 %v999_v55, %v998_v13 }
 0x437   :  { %v890_v52 = vmul.f32 %v1836_v57, %v889_v12  ;;  %v1110_v12 = vrot.slane %v1742_v51, %v1109_v6 }
 0x438   :  { %1466 = vmatmul.mubr.msk.f32.vlgmr.msra.gmra.mrb[14].mxu1 %vm398_vm2, %v1942_v11  ;;  %1561 = vmatprep.subr.bf16.mxu0 %v1560_v14 }
 0x439   :  { %1474 = vmatpush3.msra.mxu1 %v1796_v15  ;;  %1475 = vmatprep.mubr.msk.f32.mxu1 %vm1622_vm1, %v1621_v17  ;;  %v982_v15 = vld [vmem:[%s2040_s2 + $0x70] sm:$0xff]  ;;  %v983_v17 = vld [vmem:[%s2040_s2 + $0x78] sm:$0xff]  ;;  %s1623_s2 = smov 8  }
 0x43a   :  { %v1562_v57 = vpack.c.bf16 %v983_v17, %v982_v15 }
 0x43c   :  { %1476 = vmatmul.mubr.msk.f32.vlgmr.msra.gmra.mrb[16].mxu1 %vm398_vm2, %v890_v52  ;;  %1563 = vmatpush3.bf16.msra.mxu0 %v1562_v57 }
 0x503   :  { %v482_v21 = vpop.f32.mrb[10].mxu1 }
 0x504   :  { %v1447_v22 = vpop.f32.mrb[11].mxu1 }
 0x507   :  { %v640_v23 = vpop.f32.mrb[12].mxu1 }
 0x508   :  { %v1457_v24 = vpop.f32.mrb[13].mxu1  ;;  %1068 = vmatprep.mubr.f32.mxu0 %v640_v23 }
 0x509   :  { %1069 = vmatmul.mubr.f32.vlgmr.msra.gmra.mrb[10].mxu0 %v482_v21 }
 0x50b   :  { %v802_v25 = vpop.f32.mrb[14].mxu1 }
 0x50c   :  { %v1467_v26 = vpop.f32.mrb[15].mxu1 }
 0x50f   :  { %v960_v27 = vpop.f32.mrb[16].mxu1 }
 0x510   :  { %v1477_v28 = vpop.f32.mrb[17].mxu1  ;;  %1073 = vmatprep.mubr.f32.mxu0 %v960_v27  ;;  %v1221_v27 = vld [vmem:[%s2042_s4 + $0x18] sm:$0xff] }
 0x511   :  { %1074 = vmatmul.mubr.f32.gmra.mrb[12].mxu0 %v802_v25  ;;  %v1219_v25 = vld [vmem:[%s2042_s4 + $0x8] sm:$0xff] }
 0x5dc   :  { %v1416_v30 = vpop.f32.mrb[10].mxu0 }
 0x5dd   :  { %v1417_v32 = vpop.f32.mrb[11].mxu0 }
 0x5de   :  { %v1418_v33 = vadd.f32 %v1417_v32, %v1416_v30  ;;  %v1223_v30 = vld [vmem:[%s2042_s4 + $0x28] sm:$0xff]  ;;  %v1224_v32 = vld [vmem:[%s2042_s4 + $0x30] sm:$0xff] }
 0x5e0   :  { %v1071_v34 = vadd.f32 %v1418_v33, %v1003_v31  ;;  %v1225_v33 = vld [vmem:[%s2042_s4 + $0x38] sm:$0xff] }
 0x5e2   :  { %v1079_v35 = vadd.f32 %v1071_v34, %v1760_v0  ;;  %v1584_v34 = vpack.c.bf16 %v1225_v33, %v1224_v32 }
 0x5e4   :  { %v1419_v36 = vpop.f32.mrb[12].mxu0  ;;  %v1081_v37 = vsel %vm26_vm0, %v1079_v35, 0.0 }
 0x5e5   :  { %1082 = vadd.xlane.f32.xlu0 %v1081_v37  ;;  %v1420_v38 = vpop.f32.mrb[13].mxu0 }
 0x5e6   :  { %v1421_v39 = vadd.f32 %v1420_v38, %v1419_v36 }
 0x5e8   :  { %v1076_v40 = vadd.f32 %v1421_v39, %v1003_v31  ;;  %v1580_v31 = vpack.c.bf16 %v1223_v30, %v1222_v29 }
 0x5ea   :  { %v1080_v41 = vadd.f32 %v1076_v40, %v1775_v7  ;;  %v1119_v7 = vld [vmem:[%s2041_s3] sm:$0xff] }
 0x5eb   :  { %v1564_v59 = vpack.c.bf16 %v1120_v58, %v1119_v7 }
 0x5ec   :  { %v1084_v42 = vsel %vm26_vm0, %v1080_v41, 0.0 }
 0x5ed   :  { %1085 = vadd.xlane.f32.xlu1 %v1084_v42  ;;  %1565 = vmatprep.subr.bf16.mxu1 %v1564_v59 }
 0x5ee   :  { %1567 = vmatpush3.bf16.msra.mxu1 %v1564_v59 }
 0x672   :  { %v1083_v43 = vpop.xlane.xlu0 %1082 }
 0x673   :  { %v1087_v44 = vmul.f32 0.03125, %v1083_v43 }
 0x675   :  { %v1089_v45 = vsub.f32 %v1079_v35, %v1087_v44  ;;  %v1125_v35 = vsub.s32 3, %v1736_v48 }
 0x677   :  { %v1091_v46 = vmul.f32 %v1089_v45, %v1089_v45  ;;  %v1126_v36 = vrot.slane %v1742_v51, %v1125_v35 }
 0x679   :  { %v1093_v47 = vsel %vm26_vm0, %v1091_v46, 0.0 }
 0x67a   :  { %1094 = vadd.xlane.f32.xlu0 %v1093_v47  ;;  %v1086_v0 = vpop.xlane.xlu1 %1085 }
 0x67b   :  { %v1088_v49 = vmul.f32 0.03125, %v1086_v0 }
 0x67d   :  { %v1090_v53 = vsub.f32 %v1080_v41, %v1088_v49 }
 0x67f   :  { %v1092_v54 = vmul.f32 %v1090_v53, %v1090_v53 }
 0x681   :  { %v1096_v56 = vsel %vm26_vm0, %v1092_v54, 0.0  ;;  %v1228_v54 = vsub.s32 4, %v1736_v48 }
 0x682   :  { %1097 = vadd.xlane.f32.xlu1 %v1096_v56 }
 0x683   :  { %v1229_v56 = vrot.slane %v1742_v51, %v1228_v54 }
 0x690   :  { %644 = vrot.lane.b32.xlu0 %v1933_v9, %s1623_s2 }
 0x693   :  { %964 = vrot.lane.b32.xlu1 %v890_v52, %s1623_s2 }
 0x697   :  { %1316 = vrot.lane.b32.xlu1 %v1800_v18, %s1624_s8  ;;  %v1122_v18 = vld [vmem:[%s2041_s3 + $0x18] sm:$0xff]  ;;  %s1625_s3 = smov 48  }
 0x69b   :  { %1318 = vrot.lane.b32.xlu1 %v1808_v20, %s1624_s8  ;;  %v1568_v20 = vpack.c.bf16 %v1122_v18, %v1121_v60 }
 0x69d   :  { %1569 = vmatprep.subr.bf16.mxu1 %v1568_v20 }
 0x69e   :  { %1571 = vmatpush3.bf16.msra.mxu1 %v1568_v20 }
 0x707   :  { %v1095_v61 = vpop.xlane.xlu0 %1094 }
 0x708   :  { %v1099_v62 = vmul.f32 0.03125, %v1095_v61 }
 0x70a   :  { %v1101_v63 = vadd.f32 1e-05, %v1099_v62 }
 0x70b   :  { %v645_v1 = vpop.permute.xlu0 %644 }
 0x70c   :  { %1613 = vrsqrt.f32 %v1101_v63  ;;  %v647_v2 = vsel %vm398_vm2, %v1925_v3, %v645_v1  ;;  %v1116_v3 = vrot.slane %v1742_v51, %v1115_v10 }
 0x70d   :  { %1326 = vrot.lane.b32.xlu0 %v647_v2, %s1624_s8 }
 0x70f   :  { %v1098_v4 = vpop.xlane.xlu1 %1097 }
 0x710   :  { %v1100_v5 = vmul.f32 0.03125, %v1098_v4 }
 0x712   :  { %v1102_v8 = vadd.f32 1e-05, %v1100_v5 }
 0x713   :  { %v965_v9 = vpop.permute.xlu1 %964 }
 0x714   :  { %1615 = vrsqrt.f32 %v1102_v8  ;;  %v967_v50 = vsel %vm398_vm2, %v1942_v11, %v965_v9 }
 0x715   :  { %1328 = vrot.lane.b32.xlu1 %v967_v50, %s1624_s8 }
 0x716   :  { %v1614_v52 = vpop.eup %1613 }
 0x717   :  { %v1317_v13 = vpop.permute.xlu1 %1316  ;;  %v1105_v55 = vmul.f32 %v1614_v52, %v1089_v45 }
 0x718   :  { %v1322_v14 = vsel %vm26_vm0, %v1798_v16, %v1317_v13  ;;  %v1218_v16 = vld [vmem:[%s2042_s4] sm:$0xff] }
 0x719   :  { %1334 = vrot.lane.b32.xlu0 %v1322_v14, %s1625_s3  ;;  %v1111_v15 = vmul.f32 %v1110_v12, %v1105_v55  ;;  %v1572_v26 = vpack.c.bf16 %v1219_v25, %v1218_v16 }
 0x71b   :  { %v1319_v17 = vpop.permute.xlu1 %1318  ;;  %v1117_v57 = vadd.f32 %v1116_v3, %v1111_v15  ;;  %1573 = vmatprep.subr.bf16.mxu1 %v1572_v26 }
 0x71c   :  { %v1323_v21 = vsel %vm26_vm0, %v1806_v19, %v1319_v17  ;;  %v1220_v19 = vld [vmem:[%s2042_s4 + $0x10] sm:$0xff] }
 0x71d   :  { %1486 = vmatprep.mubr.msk.f32.mxu1 %vm26_vm0, %v1117_v57  ;;  %1336 = vrot.lane.b32.xlu1 %v1323_v21, %s1625_s3  ;;  %v1576_v28 = vpack.c.bf16 %v1221_v27, %v1220_v19 }
 0x71e   :  { %v1616_v11 = vpop.eup %1615 }
 0x71f   :  { %v1106_v22 = vmul.f32 %v1616_v11, %v1090_v53 }
 0x721   :  { %v1112_v23 = vmul.f32 %v1110_v12, %v1106_v22 }
 0x723   :  { %v1118_v24 = vadd.f32 %v1116_v3, %v1112_v23 }
 0x725   :  { %1487 = vmatmul.mubr.msk.f32.vlgmr.msra.gmra.mrb[18].mxu1 %vm26_vm0, %v1118_v24 }
 0x726   :  { %1575 = vmatpush3.bf16.msra.mxu1 %v1572_v26 }
 0x727   :  { %1577 = vmatprep.subr.bf16.mxu1 %v1576_v28 }
 0x72a   :  { %1579 = vmatpush3.bf16.msra.mxu1 %v1576_v28 }
 0x72b   :  { %1581 = vmatprep.subr.bf16.mxu1 %v1580_v31 }
 0x72e   :  { %1583 = vmatpush3.bf16.msra.mxu1 %v1580_v31 }
 0x72f   :  { %1585 = vmatprep.subr.bf16.mxu1 %v1584_v34 }
 0x732   :  { %1587 = vmatpush3.bf16.msra.mxu1 %v1584_v34 }
 0x77f   :  { %v1327_v18 = vpop.permute.xlu0 %1326 }
 0x787   :  { %v1329_v58 = vpop.permute.xlu1 %1328 }
 0x78b   :  { %v1335_v2 = vpop.permute.xlu0 %1334 }
 0x78f   :  { %v1337_v63 = vpop.permute.xlu1 %1336 }
 0x7f8   :  { %v1488_v37 = vpop.f32.mrb[18].mxu1 }
 0x7f9   :  { %v1205_v38 = vadd.f32 %v1488_v37, %v1126_v36  ;;  %v1199_v39 = vpop.f32.mrb[19].mxu1 }
 0x7fa   :  { %v1200_v40 = vadd.f32 %v1199_v39, %v1126_v36 }
 0x7fb   :  { %v1211_v41 = vmul.f32 0.70710677, %v1205_v38  ;;  %v1209_v0 = vmul.f32 0.5, %v1205_v38 }
 0x7fc   :  { %v1210_v42 = vmul.f32 0.70710677, %v1200_v40  ;;  %v1208_v46 = vmul.f32 0.5, %v1200_v40 }
 0x7fd   :  { %1617 = verf.f32 %v1211_v41 }
 0x7fe   :  { %1619 = verf.f32 %v1210_v42 }
 0x807   :  { %v1618_v43 = vpop.eup %1617 }
 0x808   :  { %v1620_v44 = vpop.eup %1619  ;;  %v1215_v45 = vadd.f32 1.0, %v1618_v43 }
 0x809   :  { %v1214_v47 = vadd.f32 1.0, %v1620_v44 }
 0x80a   :  { %v1217_v53 = vmul.f32 %v1215_v45, %v1209_v0 }
 0x80b   :  { %v1216_v49 = vmul.f32 %v1214_v47, %v1208_v46 }
 0x80d   :  { %1505 = vmatprep.mubr.msk.f32.mxu1 %vm1230_vm3, %v1216_v49 }
 0x80e   :  { %1506 = vmatmul.mubr.msk.f32.vlgmr.msra.gmra.mrb[20].mxu1 %vm1230_vm3, %v1217_v53 }
 0x8e1   :  { %v1507_v7 = vpop.f32.mrb[20].mxu1 }
 0x8e2   :  { %v1309_v59 = vadd.f32 %v1507_v7, %v1229_v56  ;;  %v1303_v60 = vpop.f32.mrb[21].mxu1 }
 0x8e3   :  { %v1304_v20 = vadd.f32 %v1303_v60, %v1229_v56 }
 0x8e4   :  { %v1313_v61 = vadd.f32 %v1309_v59, %v1118_v24 }
 0x8e5   :  { %v1312_v62 = vadd.f32 %v1304_v20, %v1117_v57 }
 0x8e6   :  { %v1341_v1 = vsel %vm26_vm0, %v1313_v61, %v1329_v58 }
 0x8e7   :  { %v1344_v4 = vsel %vm1342_vm4, %v1341_v1, %v1337_v63  ;;  %v1340_v5 = vsel %vm26_vm0, %v1312_v62, %v1327_v18 }
 0x8e8   :  { %v1347_v48 = vsel %vm1345_vm5, %v1344_v4, 0.0  ;;  %v1343_v6 = vsel %vm1342_vm4, %v1340_v5, %v1335_v2 }
 0x8e9   :  { %1349 = vst [vmem:[%s2043_s6 + $0x8] sm:$0xff] %v1347_v48  ;;  %v1346_v51 = vsel %vm1345_vm5, %v1343_v6, 0.0 }
 0x8ea   :  { %1348 = vst [vmem:[%s2043_s6] sm:$0xff] %v1346_v51 }

</bundles_post_ra>
